<compile_context>
chip_gen: v7x
topology: tpu7x:2x2x1
jax: 0.10.0
libtpu: 0.0.40
codegen_flags: <defaults>
</compile_context>

<pallas_src>
import functools
import math

import numpy as np
import jax
import jax.numpy as jnp
from jax.experimental import pallas as pl
from jax.experimental.pallas import tpu as pltpu


# ----------------------------------------------------------------------------
# Kernels
# ----------------------------------------------------------------------------
def _bc_spool_kron_kernel(x_ref, k_ref, o_ref):
    """Single-matmul (Kronecker-fused) spectral pooling step.

    x_ref: (1, 2, nb, H*W)   [real channel block ; imag channel block]
    k_ref: (H*W, 2*Ppad)     [Re(K) | 0-pad | Im(K) | 0-pad], Ppad = roundup(Hp*Wp, 128)
    o_ref: (1, 2, nb, Hp*Wp)
    """
    P = o_ref.shape[-1]
    Ppad = k_ref.shape[-1] // 2
    f32 = jnp.float32

    k = k_ref[...]                 # VMEM-resident constant (constant index_map)
    xr = x_ref[0, 0]               # (nb, H*W) lane-dense LHS, no relayout needed
    xi = x_ref[0, 1]

    # Two matmuls sharing the same RHS (instead of one on stacked rows) so no
    # sub-8 sublane row slicing of the result is needed afterwards.
    ar = jnp.dot(xr, k, preferred_element_type=f32)     # (nb, 2*Ppad)
    ai = jnp.dot(xi, k, preferred_element_type=f32)

    # Column slices start at 0 / Ppad (128-lane tile aligned) -> no lane shifts.
    o_ref[0, 0] = (ar[:, :P] - ai[:, Ppad:Ppad + P]).astype(o_ref.dtype)
    o_ref[0, 1] = (ar[:, Ppad:Ppad + P] + ai[:, :P]).astype(o_ref.dtype)


def _bc_spool_two_stage_kernel(x_ref, l_ref, r_ref, o_ref):
    """Fallback for large H, W (Kronecker operator too big for VMEM).

    x_ref: (1, 2, nb, H, W);  l_ref: (H, 2*Hp) = [ML.re^T | ML.im^T];
    r_ref: (W, 2*Wp) = [MR.re | MR.im];  o_ref: (1, 2, nb, Hp, Wp)
    """
    _, _, nb, H, W = x_ref.shape
    Hp = l_ref.shape[1] // 2
    Wp = r_ref.shape[1] // 2
    f32 = jnp.float32

    x = x_ref[0]                                   # (2, nb, H, W)

    # Left multiply T = ML @ X on transposed images (contraction on lanes).
    xt = jnp.transpose(x, (0, 1, 3, 2))            # (2, nb, W, H)
    a = jnp.dot(xt.reshape(2 * nb * W, H), l_ref[...],
                preferred_element_type=f32)        # (2*nb*W, 2*Hp)
    nw = nb * W
    tr_t = a[:nw, :Hp] - a[nw:, Hp:]
    ti_t = a[nw:, :Hp] + a[:nw, Hp:]
    t_t = jnp.concatenate([tr_t, ti_t], axis=0)    # (2*nb*W, Hp)

    # Right multiply OUT = T @ MR.
    t = jnp.transpose(t_t.reshape(2 * nb, W, Hp), (0, 2, 1))   # (2*nb, Hp, W)
    q = jnp.dot(t.reshape(2 * nb * Hp, W), r_ref[...],
                preferred_element_type=f32)        # (2*nb*Hp, 2*Wp)
    nh = nb * Hp
    o_r = q[:nh, :Wp] - q[nh:, Wp:]
    o_i = q[nh:, :Wp] + q[:nh, Wp:]
    o_ref[0, 0] = o_r.reshape(nb, Hp, Wp).astype(o_ref.dtype)
    o_ref[0, 1] = o_i.reshape(nb, Hp, Wp).astype(o_ref.dtype)


# ----------------------------------------------------------------------------
# Constant operators (fold fft2 -> crop -> ifft2)
# ----------------------------------------------------------------------------
@functools.lru_cache(maxsize=None)
def _pool_matrices(H, W, gamma, norm):
    topf1 = int(math.ceil(H * gamma / 2))
    topf2 = int(math.ceil(W * gamma / 2))
    midf1 = H // 2 + topf1
    midf2 = W // 2 + topf2
    rows = np.concatenate([np.arange(topf1), np.arange(midf1, H)])
    cols = np.concatenate([np.arange(topf2), np.arange(midf2, W)])
    Hp, Wp = len(rows), len(cols)

    h = np.arange(H)
    w = np.arange(W)
    FH = np.exp(-2j * np.pi * np.outer(rows, h) / H)   # (Hp, H) cropped fwd DFT (rows)
    FW = np.exp(-2j * np.pi * np.outer(w, cols) / W)   # (W, Wp) cropped fwd DFT (cols)
    hp = np.arange(Hp)
    wp = np.arange(Wp)
    IH = np.exp(2j * np.pi * np.outer(hp, hp) / Hp)    # (Hp, Hp) inverse DFT (rows)
    IW = np.exp(2j * np.pi * np.outer(wp, wp) / Wp)    # (Wp, Wp) inverse DFT (cols)

    if norm:
        # torch.fft(norm=True): 1/sqrt(H*W); torch.ifft(norm=True): 1/sqrt(Hp*Wp)
        scale = 1.0 / (np.sqrt(H * W) * np.sqrt(Hp * Wp))
    else:
        scale = 1.0 / (Hp * Wp)

    ML = scale * (IH @ FH)   # (Hp, H)
    MR = FW @ IW             # (W, Wp)
    return ML, MR, Hp, Wp


def _round_up(x, m):
    return -(-x // m) * m


@functools.lru_cache(maxsize=None)
def _kron_constant(H, W, gamma, norm):
    """Kcat = [Re(K) | pad | Im(K) | pad], K = kron(ML^T, MR) of shape (H*W, Hp*Wp)."""
    ML, MR, Hp, Wp = _pool_matrices(H, W, gamma, norm)
    P = Hp * Wp
    Ppad = _round_up(P, 128)
    K = np.kron(ML.T, MR)                       # K[h*W+w, i*Wp+j] = ML[i,h] * MR[w,j]
    Kcat = np.zeros((H * W, 2 * Ppad), np.float32)
    Kcat[:, :P] = K.real
    Kcat[:, Ppad:Ppad + P] = K.imag
    return Kcat


@functools.lru_cache(maxsize=None)
def _two_stage_constants(H, W, gamma, norm):
    ML, MR, Hp, Wp = _pool_matrices(H, W, gamma, norm)
    lcat = np.concatenate([ML.real.T, ML.imag.T], axis=1).astype(np.float32)  # (H, 2Hp)
    rcat = np.concatenate([MR.real, MR.imag], axis=1).astype(np.float32)      # (W, 2Wp)
    return lcat, rcat, Hp, Wp


# ----------------------------------------------------------------------------
# Generation-aware tiling helpers
# ----------------------------------------------------------------------------
def _vmem_capacity_bytes():
    try:
        return int(pltpu.get_tpu_info().vmem_capacity_bytes)
    except Exception:
        return 64 << 20          # conservative default (v7x physical VMEM)


def _num_tensorcores():
    try:
        kind = jax.devices()[0].device_kind.lower()
    except Exception:
        return 1
    return 2 if ("v7" in kind or "7x" in kind) else 1


def _divisors(n):
    return [d for d in range(1, n + 1) if n % d == 0]


def _kron_block_bytes(nb, HW, P, Ppad, in_isz, out_isz):
    # Padded (sublane 8 / lane 128) footprint of double-buffered IO blocks plus
    # the live in-kernel f32 intermediates (ar, ai).
    nb8 = _round_up(nb, 8)
    in_b = 2 * nb8 * _round_up(HW, 128) * in_isz
    out_b = 2 * nb8 * _round_up(P, 128) * out_isz
    inter = 2 * nb8 * 2 * Ppad * 4
    return 2 * (in_b + out_b) + inter


def _choose_nb_kron(Cc, HW, P, Ppad, in_isz, out_isz, budget):
    # Block last-two dims are (nb, HW): nb must be a multiple of 8 or the full
    # channel extent to satisfy the (8,128) block rule.
    cands = [d for d in _divisors(Cc) if d == Cc or d % 8 == 0]
    fits = [d for d in cands if _kron_block_bytes(d, HW, P, Ppad, in_isz, out_isz) <= budget]
    return max(fits) if fits else min(cands)


def _two_stage_block_bytes(nb, H, W, Hp, Wp, in_isz, out_isz):
    in_b = 2 * nb * _round_up(H, 8) * _round_up(W, 128) * in_isz
    out_b = 2 * nb * _round_up(Hp, 8) * _round_up(Wp, 128) * out_isz
    inter = 4 * 2 * nb * _round_up(H, 8) * _round_up(W, 128) * 4  # xt/a/t_t/t/q (rough, f32)
    return 2 * (in_b + out_b) + inter


def _choose_nb_two_stage(Cc, H, W, Hp, Wp, in_isz, out_isz, budget):
    fits = [d for d in _divisors(Cc)
            if _two_stage_block_bytes(d, H, W, Hp, Wp, in_isz, out_isz) <= budget]
    return max(fits) if fits else 1


# ----------------------------------------------------------------------------
# Wrapper
# ----------------------------------------------------------------------------
@functools.partial(jax.jit,
                   static_argnames=("gamma", "norm", "block_channels", "force_two_stage"))
def bc_spool(x, gamma=0.5, norm=True, block_channels=None, force_two_stage=False):
    B, C, H, W = x.shape
    assert C % 2 == 0, "channel dim must be even (real/imag split)"
    Cc = C // 2
    HW = H * W
    out_dtype = x.dtype
    in_isz = jnp.dtype(x.dtype).itemsize
    out_isz = jnp.dtype(out_dtype).itemsize

    cap = _vmem_capacity_bytes()
    # <= ~48 MiB scoped on v7x (64 MiB physical), <= 96 MiB on v5e/v6e (128 MiB).
    vmem_limit = min((cap * 3) // 4, 96 << 20)

    _, _, Hp, Wp = _pool_matrices(H, W, float(gamma), bool(norm))
    P = Hp * Wp
    Ppad = _round_up(P, 128)
    kron_bytes = HW * 2 * Ppad * 4
    use_kron = (not force_two_stage) and (kron_bytes <= vmem_limit // 4)

    if use_kron:
        # ---- primary path: one Kronecker-fused matmul per re/im part ----
        budget = vmem_limit - kron_bytes - (4 << 20)
        if block_channels is not None:
            nb = block_channels
            assert Cc % nb == 0
        else:
            nb = _choose_nb_kron(Cc, HW, P, Ppad, in_isz, out_isz, budget)
            # Only on 2-TensorCore chips (v7x): keep grid length >= 2 so both
            # cores get work, and only if a still-legal smaller block exists.
            if _num_tensorcores() >= 2 and B * (Cc // nb) < 2:
                smaller = [d for d in _divisors(Cc)
                           if d < nb and (d == Cc or d % 8 == 0)]
                if smaller:
                    nb = max(smaller)
        blk = _kron_block_bytes(nb, HW, P, Ppad, in_isz, out_isz)
        vmem_limit = max(vmem_limit,
                         min(blk + kron_bytes + (4 << 20), (cap * 95) // 100))

        x4 = x.reshape(B, 2, Cc, HW)          # free reshape; lane-dense blocks, no dtype cast
        kcat = jnp.asarray(_kron_constant(H, W, float(gamma), bool(norm)))

        out4 = pl.pallas_call(
            _bc_spool_kron_kernel,
            out_shape=jax.ShapeDtypeStruct((B, 2, Cc, P), out_dtype),
            grid_spec=pltpu.PrefetchScalarGridSpec(
                num_scalar_prefetch=0,
                grid=(B, Cc // nb),
                in_specs=[
                    pl.BlockSpec((1, 2, nb, HW), lambda b, j: (b, 0, j, 0)),
                    # constant index_map -> stays VMEM-resident across steps
                    pl.BlockSpec((HW, 2 * Ppad), lambda b, j: (0, 0)),
                ],
                out_specs=pl.BlockSpec((1, 2, nb, P), lambda b, j: (b, 0, j, 0)),
            ),
            compiler_params=pltpu.CompilerParams(
                dimension_semantics=("parallel", "parallel"),
                vmem_limit_bytes=int(vmem_limit)),
        )(x4, kcat)
        # (B, 2, Cc, Hp*Wp) -> (B, C, Hp, Wp) == concat(real, imag) on channels; free reshape.
        return out4.reshape(B, C, Hp, Wp)

    # ---- fallback path: two-stage (ML @ X) @ MR for large H*W ----
    lcat_np, rcat_np, Hp, Wp = _two_stage_constants(H, W, float(gamma), bool(norm))
    const_bytes = (lcat_np.size + rcat_np.size) * 4
    budget = vmem_limit - const_bytes - (4 << 20)
    if block_channels is not None:
        nb = block_channels
        assert Cc % nb == 0
    else:
        nb = _choose_nb_two_stage(Cc, H, W, Hp, Wp, in_isz, out_isz, budget)
    blk = _two_stage_block_bytes(nb, H, W, Hp, Wp, in_isz, out_isz)
    vmem_limit = max(vmem_limit, min(blk + const_bytes + (4 << 20), (cap * 95) // 100))

    x5 = x.reshape(B, 2, Cc, H, W)            # free reshape, no dtype cast
    lcat = jnp.asarray(lcat_np)
    rcat = jnp.asarray(rcat_np)

    out5 = pl.pallas_call(
        _bc_spool_two_stage_kernel,
        out_shape=jax.ShapeDtypeStruct((B, 2, Cc, Hp, Wp), out_dtype),
        grid_spec=pltpu.PrefetchScalarGridSpec(
            num_scalar_prefetch=0,
            grid=(B, Cc // nb),
            in_specs=[
                pl.BlockSpec((1, 2, nb, H, W), lambda b, j: (b, 0, j, 0, 0)),
                pl.BlockSpec((H, 2 * Hp), lambda b, j: (0, 0)),
                pl.BlockSpec((W, 2 * Wp), lambda b, j: (0, 0)),
            ],
            out_specs=pl.BlockSpec((1, 2, nb, Hp, Wp), lambda b, j: (b, 0, j, 0, 0)),
        ),
        compiler_params=pltpu.CompilerParams(
            dimension_semantics=("parallel", "parallel"),
            vmem_limit_bytes=int(vmem_limit)),
    )(x5, lcat, rcat)
    return out5.reshape(B, C, Hp, Wp)


# ----------------------------------------------------------------------------
# Pure-JAX reference (old torch.fft / torch.ifft semantics) + self-test
# ----------------------------------------------------------------------------
def _reference(x, gamma=0.5, norm=True):
    B, C, H, W = x.shape
    Cc = C // 2
    xc = x[:, :Cc].astype(jnp.complex64) + 1j * x[:, Cc:].astype(jnp.complex64)
    xff = jnp.fft.fft2(xc, axes=(2, 3))
    if norm:
        xff = xff / np.sqrt(H * W)
    topf1 = int(math.ceil(H * gamma / 2))
    topf2 = int(math.ceil(W * gamma / 2))
    midf1 = H // 2 + topf1
    midf2 = W // 2 + topf2
    f11 = xff[:, :, :topf1, :topf2]
    f12 = xff[:, :, midf1:, :topf2]
    f21 = xff[:, :, :topf1, midf2:]
    f22 = xff[:, :, midf1:, midf2:]
    fff1 = jnp.concatenate([f11, f12], axis=2)
    fff2 = jnp.concatenate([f21, f22], axis=2)
    f_pool = jnp.concatenate([fff1, fff2], axis=3)
    Hp, Wp = f_pool.shape[2], f_pool.shape[3]
    ifft = jnp.fft.ifft2(f_pool, axes=(2, 3))   # jnp ifft2 divides by Hp*Wp
    if norm:
        ifft = ifft * np.sqrt(Hp * Wp)          # -> overall 1/sqrt(Hp*Wp), like torch.ifft(norm=True)
    return jnp.concatenate([ifft.real, ifft.imag], axis=1)


if __name__ == "__main__":
    key = jax.random.PRNGKey(0)
    B, C, H, W = 2, 4, 16, 16
    x = jax.random.normal(key, (B, C, H, W), dtype=jnp.float32)

    ref = _reference(x, gamma=0.5, norm=True)

    # Primary (Kronecker-fused) path.
    out = jax.block_until_ready(bc_spool(x, gamma=0.5, norm=True))
    np.testing.assert_allclose(np.asarray(out), np.asarray(ref), rtol=2e-4, atol=2e-4)

    # Also exercise the large-spatial two-stage fallback once (forced).
    out2 = jax.block_until_ready(bc_spool(x, gamma=0.5, norm=True, force_two_stage=True))
    np.testing.assert_allclose(np.asarray(out2), np.asarray(ref), rtol=2e-4, atol=2e-4)

    print("KERNEL_OK")
</pallas_src>

<mosaic_0001>
module attributes {stable_mosaic.version = 11 : i64} {
  func.func @_bc_spool_kron_kernel(%arg0: i32, %arg1: i32, %arg2: memref<1x2x2x256xf32, #tpu.memory_space<vmem>>, %arg3: memref<256x256xf32, #tpu.memory_space<vmem>>, %arg4: memref<1x2x2x64xf32, #tpu.memory_space<vmem>>) attributes {dimension_semantics = [#tpu.dimension_semantics<parallel>, #tpu.dimension_semantics<parallel>], iteration_bounds = array<i64: 2, 1>, scalar_prefetch = 0 : i64, scratch_operands = 0 : i64, tpu.core_type = #tpu.core_type<tc>, window_params = [{transform_indices = @transform_0, window_bounds = array<i64: 1, 2, 2, 256>}, {pipeline_mode = #tpu.pipeline_mode<synchronous>, transform_indices = @transform_1, window_bounds = array<i64: 256, 256>}, {transform_indices = @transform_2, window_bounds = array<i64: 1, 2, 2, 64>}]} {
    %c0 = arith.constant 0 : index
    %c0_0 = arith.constant 0 : index
    %0 = vector.load %arg3[%c0, %c0_0] : memref<256x256xf32, #tpu.memory_space<vmem>>, vector<256x256xf32>
    %c0_1 = arith.constant 0 : index
    %c0_2 = arith.constant 0 : index
    %c0_3 = arith.constant 0 : index
    %c0_4 = arith.constant 0 : index
    %1 = vector.load %arg2[%c0_1, %c0_2, %c0_3, %c0_4] : memref<1x2x2x256xf32, #tpu.memory_space<vmem>>, vector<1x1x2x256xf32>
    %2 = vector.shape_cast %1 : vector<1x1x2x256xf32> to vector<2x256xf32>
    %c0_5 = arith.constant 0 : index
    %c1 = arith.constant 1 : index
    %c0_6 = arith.constant 0 : index
    %c0_7 = arith.constant 0 : index
    %3 = vector.load %arg2[%c0_5, %c1, %c0_6, %c0_7] : memref<1x2x2x256xf32, #tpu.memory_space<vmem>>, vector<1x1x2x256xf32>
    %4 = vector.shape_cast %3 : vector<1x1x2x256xf32> to vector<2x256xf32>
    %cst = arith.constant dense<0.000000e+00> : vector<2x256xf32>
    %5 = tpu.matmul %2, %0, %cst {dimension_numbers = #tpu.dot_dimension_numbers<[1], [0], [0], [1], [0, 0, 1, 1], [], []>} : vector<2x256xf32>, vector<256x256xf32>, vector<2x256xf32> -> vector<2x256xf32>
    %cst_8 = arith.constant dense<0.000000e+00> : vector<2x256xf32>
    %6 = tpu.matmul %4, %0, %cst_8 {dimension_numbers = #tpu.dot_dimension_numbers<[1], [0], [0], [1], [0, 0, 1, 1], [], []>} : vector<2x256xf32>, vector<256x256xf32>, vector<2x256xf32> -> vector<2x256xf32>
    %7 = vector.extract_strided_slice %5 {offsets = [0, 0], sizes = [2, 64], strides = [1, 1]} : vector<2x256xf32> to vector<2x64xf32>
    %8 = vector.extract_strided_slice %6 {offsets = [0, 128], sizes = [2, 64], strides = [1, 1]} : vector<2x256xf32> to vector<2x64xf32>
    %9 = arith.subf %7, %8 : vector<2x64xf32>
    %c0_9 = arith.constant 0 : index
    %c0_10 = arith.constant 0 : index
    %c0_11 = arith.constant 0 : index
    %c0_12 = arith.constant 0 : index
    %10 = vector.load %arg4[%c0_9, %c0_10, %c0_11, %c0_12] : memref<1x2x2x64xf32, #tpu.memory_space<vmem>>, vector<1x1x2x64xf32>
    %11 = vector.shape_cast %10 : vector<1x1x2x64xf32> to vector<2x64xf32>
    %12 = vector.shape_cast %9 : vector<2x64xf32> to vector<1x1x2x64xf32>
    tpu.vector_store %arg4[%c0_9, %c0_10, %c0_11, %c0_12], %12 {strides = array<i32>} : memref<1x2x2x64xf32, #tpu.memory_space<vmem>>, vector<1x1x2x64xf32>,
    %13 = vector.extract_strided_slice %5 {offsets = [0, 128], sizes = [2, 64], strides = [1, 1]} : vector<2x256xf32> to vector<2x64xf32>
    %14 = vector.extract_strided_slice %6 {offsets = [0, 0], sizes = [2, 64], strides = [1, 1]} : vector<2x256xf32> to vector<2x64xf32>
    %15 = arith.addf %13, %14 : vector<2x64xf32>
    %c0_13 = arith.constant 0 : index
    %c1_14 = arith.constant 1 : index
    %c0_15 = arith.constant 0 : index
    %c0_16 = arith.constant 0 : index
    %16 = vector.load %arg4[%c0_13, %c1_14, %c0_15, %c0_16] : memref<1x2x2x64xf32, #tpu.memory_space<vmem>>, vector<1x1x2x64xf32>
    %17 = vector.shape_cast %16 : vector<1x1x2x64xf32> to vector<2x64xf32>
    %18 = vector.shape_cast %15 : vector<2x64xf32> to vector<1x1x2x64xf32>
    tpu.vector_store %arg4[%c0_13, %c1_14, %c0_15, %c0_16], %18 {strides = array<i32>} : memref<1x2x2x64xf32, #tpu.memory_space<vmem>>, vector<1x1x2x64xf32>,
    return
  }
  func.func @transform_0(%arg0: i32, %arg1: i32) -> (i32, i32, i32, i32) {
    %c0_i32 = arith.constant 0 : i32
    %c0_i32_0 = arith.constant 0 : i32
    %c0_i32_1 = arith.constant 0 : i32
    return %arg0, %c0_i32, %arg1, %c0_i32_0 : i32, i32, i32, i32
  }
  func.func @transform_1(%arg0: i32, %arg1: i32) -> (i32, i32) {
    %c0_i32 = arith.constant 0 : i32
    %c0_i32_0 = arith.constant 0 : i32
    %c0_i32_1 = arith.constant 0 : i32
    return %c0_i32, %c0_i32_0 : i32, i32
  }
  func.func @transform_2(%arg0: i32, %arg1: i32) -> (i32, i32, i32, i32) {
    %c0_i32 = arith.constant 0 : i32
    %c0_i32_0 = arith.constant 0 : i32
    %c0_i32_1 = arith.constant 0 : i32
    return %arg0, %c0_i32, %arg1, %c0_i32_0 : i32, i32, i32, i32
  }
}

</mosaic_0001>

<bundles_post_ra>
// kernel: bc_spool.1
= control target key start
LH: loop header
LB: loop body
LE: loop exit
PB: predicated region body
PF: predicated region fallthrough
CT: control target
= control target key end

     0   :  { %7 = vsyncpa [#allocation3], 0  ;;  %s787_s9 = smov 0   ;;  %s789_s10 = smov 0   ;;  %s877_s0 = inlined_call_operand.vmem [shape: f32[2,2,2,256], index: 0, kind: input, shape index: {}]   ;;  %s878_s1 = inlined_call_operand.hbm [shape: f32[256,256], index: 1, kind: input, shape index: {}]   ;;  %s879_s2 = inlined_call_operand.vmem [shape: f32[2,2,2,64], index: 2, kind: output, shape index: {}]  }
   0x1   :  { %s791_s11 = smov 0  }
   0x2 LB: > { %s529_s12 = sadd.s32 4294967295, %s767_s11   ;;  %s25_s13 = sadd.s32 1, %s763_s10  ;;  %s767_s11 = sphi %s791_s11, %s13_s11   ;;  %s763_s10 = sphi %s789_s10, %s889_s10   ;;  %s759_s9 = sphi %s787_s9, %s888_s9  }
   0x3   : > { %p27_p0 = scmp.ge.s32.totalorder %s25_s13, 2  ;;  %p531_p1 = scmp.ge.s32.totalorder %s767_s11, 1 }
   0x4   : > { %p107_p2 = scmp.lt.s32.totalorder %s767_s11, 3  ;;  %p812_p4 = scmp.eq.s32.totalorder %s529_s12, 0 }
   0x5   : > { %s891_s13 = smov (%p27_p0, %s25_s13), 0  ;;  %s769_s16 = smov [#allocation2]  }
   0x6   : > { %p808_p3 = pnand %p531_p1, %p107_p2  ;;  %s119_s17 = sshll.u32 %s769_s16, 4  ;;  %s120_s17 = int_to_ptr.vmem [resolvable:$true] %s119_s17 }
   0x7   : > { %s884_s15 = scalar_select %p812_p4, 1, 0 }
   0x8   : > { %s883_s14 = scalar_select %p808_p3, 1, 0 }
   0x9   : > { %p680_p5 = pneg %p808_p3  ;;  %s713_s21 = scalar_lea.hbm %s878_s1, 8192 }
   0xa   : > { %p714_p7 = scmp.ne.s32.totalorder %s878_s1, %s713_s21  ;;  %p720_p11 = scmp.lt.u32.totalorder %s713_s21, %s878_s1 }
   0xb   : > { %p820_p6 = pnand %p812_p4, %p680_p5 }
   0xd   : > { %p715_p8 = pneg %p820_p6 }
   0xf   : > { %p716_p9 = pnand %p715_p8, %p714_p7 }
  0x11   : > { %p717_p10 = pneg %p716_p9 }
  0x13   : > { %p722_p12 = pnand %p720_p11, %p717_p10 }
  0x15   : > { %725 = shalt.err (!%p722_p12)
}
  0x16   : > { %s726_s26 = scalar_lea.vmem %s120_s17, 8192  ;;  %p734_p2 = scmp.lt.s32.totalorder %s120_s17, %s120_s17 }
  0x17   : > { %p727_p13 = scmp.ne.s32.totalorder %s120_s17, %s726_s26  ;;  %p735_p5 = scmp.lt.s32.totalorder %s726_s26, %s726_s26 }
  0x19   : > { %p729_p0 = pnand %p727_p13, %p715_p8  ;;  %p736_p4 = por %p735_p5, %p734_p2 }
  0x1b   : > { %p730_p1 = pneg %p729_p0 }
  0x1d   : > { %p737_p3 = pnand %p736_p4, %p730_p1 }
  0x1f   : > { %740 = shalt.err (!%p737_p3)
}
  0x20   : > { %s770_s27 = smov 256   ;;  %s771_s28 = smov 16  }
  0x21   : > { %683 = dma.hbm_to_vmem [thread:$0]  (!%p820_p6), %s878_s1, 8192, %s120_s17, [#allocation3], %s770_s27, %s770_s27, %s771_s28  }
  0x22   : > { %p886_p7 = scmp.ne.s32.totalorder %s883_s14, 0 }
  0x23   : > { %p887_p9 = scmp.ne.s32.totalorder (!%p886_p7), %s884_s15, 0 }
  0x24   : > { %147 = sbr.rel (%p886_p7) target bundleno = 327 (0x147), region = 28 }
  0x2b   : > { %754 = dma.done.wait (%p887_p9), [#allocation3], 8192  }
  0x2c   : > { %756 = vsyncadd (%p887_p9), [#allocation3], 4294959104  ;;  %v194_v0 = vld [vmem:[#allocation2 + $0x8] sm:$0xff]  ;;  %v196_v1 = vld [vmem:[#allocation2 + $0x18] sm:$0xff]  ;;  %p176_p3 = scmp.lt.s32.totalorder %s759_s9, 1  ;;  %vm425_vm0 = vcmask 517120  }
  0x2d   : > { %v193_v2 = vld [vmem:[#allocation2] sm:$0xff]  ;;  %v548_v3 = vpack.c.bf16 %v196_v1, %v194_v0  ;;  %v195_v4 = vld [vmem:[#allocation2 + $0x10] sm:$0xff]  ;;  %v198_v5 = vld [vmem:[#allocation2 + $0x28] sm:$0xff] }
  0x2e   : > { %v200_v6 = vld [vmem:[#allocation2 + $0x38] sm:$0xff]  ;;  %v550_v7 = vpack.c.bf16 %v195_v4, %v193_v2  ;;  %v197_v9 = vld [vmem:[#allocation2 + $0x20] sm:$0xff]  ;;  %v199_v10 = vld [vmem:[#allocation2 + $0x30] sm:$0xff]  ;;  %s893_s9 = smov (!%p176_p3, %s759_s9), 1 }
  0x2f   : > { %v552_v8 = vpack.c.bf16 %v200_v6, %v198_v5  ;;  %v202_v11 = vld [vmem:[#allocation2 + $0x48] sm:$0xff]  ;;  %549 = vmatprep.subr.bf16.mxu0 %v548_v3  ;;  %613 = vmatprep.subr.bf16.mxu1 %v548_v3  ;;  %v204_v12 = vld [vmem:[#allocation2 + $0x58] sm:$0xff]  ;;  %v554_v13 = vpack.c.bf16 %v199_v10, %v197_v9  ;;  %v201_v15 = vld [vmem:[#allocation2 + $0x40] sm:$0xff]  ;;  %s546_s3 = sshll.u32 %s893_s9, 3  ;;  %s547_s7 = sshll.u32 %s893_s9, 2 }
  0x30   : > { %551 = vmatpush1.bf16.msra.mxu0 %v550_v7  ;;  %615 = vmatpush1.bf16.msra.mxu1 %v550_v7  ;;  %v556_v14 = vpack.c.bf16 %v204_v12, %v202_v11  ;;  %v203_v16 = vld [vmem:[#allocation2 + $0x50] sm:$0xff]  ;;  %v206_v17 = vld [vmem:[#allocation2 + $0x68] sm:$0xff]  ;;  %v208_v18 = vld [vmem:[#allocation2 + $0x78] sm:$0xff]  ;;  %s184_s6 = scalar_lea.vmem %s877_s0, %s546_s3  ;;  %s192_s14 = scalar_lea.vmem %s879_s2, %s547_s7 }
  0x31   : > { %553 = vmatprep.subr.bf16.mxu0 %v552_v8  ;;  %617 = vmatprep.subr.bf16.mxu1 %v552_v8  ;;  %v558_v19 = vpack.c.bf16 %v203_v16, %v201_v15  ;;  %v560_v20 = vpack.c.bf16 %v208_v18, %v206_v17  ;;  %v205_v21 = vld [vmem:[#allocation2 + $0x60] sm:$0xff]  ;;  %v207_v22 = vld [vmem:[#allocation2 + $0x70] sm:$0xff]  ;;  %v210_v23 = vld [vmem:[#allocation2 + $0x88] sm:$0xff] }
  0x32   : > { %v212_v24 = vld [vmem:[#allocation2 + $0x98] sm:$0xff]  ;;  %v562_v25 = vpack.c.bf16 %v207_v22, %v205_v21  ;;  %v209_v27 = vld [vmem:[#allocation2 + $0x80] sm:$0xff]  ;;  %v211_v28 = vld [vmem:[#allocation2 + $0x90] sm:$0xff] }
  0x33   : > { %v564_v26 = vpack.c.bf16 %v212_v24, %v210_v23  ;;  %v214_v29 = vld [vmem:[#allocation2 + $0xa8] sm:$0xff]  ;;  %v216_v30 = vld [vmem:[#allocation2 + $0xb8] sm:$0xff]  ;;  %v566_v31 = vpack.c.bf16 %v211_v28, %v209_v27  ;;  %v213_v33 = vld [vmem:[#allocation2 + $0xa0] sm:$0xff] }
  0x34   : > { %555 = vmatpush1.bf16.msra.mxu0 %v554_v13  ;;  %619 = vmatpush1.bf16.msra.mxu1 %v554_v13  ;;  %v568_v32 = vpack.c.bf16 %v216_v30, %v214_v29  ;;  %v215_v34 = vld [vmem:[#allocation2 + $0xb0] sm:$0xff]  ;;  %v218_v35 = vld [vmem:[#allocation2 + $0xc8] sm:$0xff]  ;;  %v220_v36 = vld [vmem:[#allocation2 + $0xd8] sm:$0xff] }
  0x35   : > { %557 = vmatprep.subr.bf16.mxu0 %v556_v14  ;;  %621 = vmatprep.subr.bf16.mxu1 %v556_v14  ;;  %v570_v37 = vpack.c.bf16 %v215_v34, %v213_v33  ;;  %v572_v38 = vpack.c.bf16 %v220_v36, %v218_v35  ;;  %v217_v39 = vld [vmem:[#allocation2 + $0xc0] sm:$0xff]  ;;  %v219_v40 = vld [vmem:[#allocation2 + $0xd0] sm:$0xff]  ;;  %v222_v42 = vld [vmem:[#allocation2 + $0xe8] sm:$0xff] }
  0x36   : > { %v854_v41 = vld.sshfl [vmem:[%s184_s6] sm:$0x33 pattern:$0x76325410]  ;;  %v224_v43 = vld [vmem:[#allocation2 + $0xf8] sm:$0xff]  ;;  %v574_v47 = vpack.c.bf16 %v219_v40, %v217_v39  ;;  %v223_v50 = vld [vmem:[#allocation2 + $0xf0] sm:$0xff] }
  0x37   : > { %v268_v44 = vcombine.high %v854_v41, %v854_v41  ;;  %v858_v45 = vld.sshfl [vmem:[%s184_s6 + $0x4] sm:$0x33 pattern:$0x76325410]  ;;  %v576_v48 = vpack.c.bf16 %v224_v43, %v222_v42  ;;  %v226_v51 = vld [vmem:[#allocation2 + $0x108] sm:$0xff]  ;;  %v228_v52 = vld [vmem:[#allocation2 + $0x118] sm:$0xff] }
  0x38   : > { %559 = vmatpush1.bf16.msra.mxu0 %v558_v19  ;;  %623 = vmatpush1.bf16.msra.mxu1 %v558_v19  ;;  %v350_v46 = vcombine.high %v858_v45, %v858_v45  ;;  %v221_v49 = vld [vmem:[#allocation2 + $0xe0] sm:$0xff]  ;;  %v580_v54 = vpack.c.bf16 %v228_v52, %v226_v51  ;;  %v227_v56 = vld [vmem:[#allocation2 + $0x110] sm:$0xff]  ;;  %v230_v57 = vld [vmem:[#allocation2 + $0x128] sm:$0xff] }
  0x39   : > { %561 = vmatprep.subr.bf16.mxu0 %v560_v20  ;;  %625 = vmatprep.subr.bf16.mxu1 %v560_v20  ;;  %v578_v53 = vpack.c.bf16 %v223_v50, %v221_v49  ;;  %v225_v55 = vld [vmem:[#allocation2 + $0x100] sm:$0xff]  ;;  %v232_v58 = vld [vmem:[#allocation2 + $0x138] sm:$0xff]  ;;  %v231_v62 = vld [vmem:[#allocation2 + $0x130] sm:$0xff] }
  0x3a   : > { %335 = vmatprep.mubr.f32.mxu0 %v268_v44  ;;  %417 = vmatprep.mubr.f32.mxu1 %v350_v46  ;;  %v582_v59 = vpack.c.bf16 %v227_v56, %v225_v55  ;;  %v584_v60 = vpack.c.bf16 %v232_v58, %v230_v57  ;;  %v229_v61 = vld [vmem:[#allocation2 + $0x120] sm:$0xff]  ;;  %v234_v63 = vld [vmem:[#allocation2 + $0x148] sm:$0xff]  ;;  %v236_v0 = vld [vmem:[#allocation2 + $0x158] sm:$0xff] }
  0x3b   : > { %v586_v1 = vpack.c.bf16 %v231_v62, %v229_v61  ;;  %v588_v2 = vpack.c.bf16 %v236_v0, %v234_v63  ;;  %v233_v3 = vld [vmem:[#allocation2 + $0x140] sm:$0xff]  ;;  %v235_v4 = vld [vmem:[#allocation2 + $0x150] sm:$0xff]  ;;  %v238_v5 = vld [vmem:[#allocation2 + $0x168] sm:$0xff] }
  0x3c   : > { %563 = vmatpush1.bf16.msra.mxu0 %v562_v25  ;;  %627 = vmatpush1.bf16.msra.mxu1 %v562_v25  ;;  %v240_v6 = vld [vmem:[#allocation2 + $0x178] sm:$0xff]  ;;  %v590_v7 = vpack.c.bf16 %v235_v4, %v233_v3  ;;  %v237_v9 = vld [vmem:[#allocation2 + $0x160] sm:$0xff]  ;;  %v239_v10 = vld [vmem:[#allocation2 + $0x170] sm:$0xff] }
  0x3d   : > { %565 = vmatprep.subr.bf16.mxu0 %v564_v26  ;;  %629 = vmatprep.subr.bf16.mxu1 %v564_v26  ;;  %v592_v8 = vpack.c.bf16 %v240_v6, %v238_v5  ;;  %v242_v11 = vld [vmem:[#allocation2 + $0x188] sm:$0xff]  ;;  %v244_v12 = vld [vmem:[#allocation2 + $0x198] sm:$0xff]  ;;  %v594_v13 = vpack.c.bf16 %v239_v10, %v237_v9  ;;  %v241_v15 = vld [vmem:[#allocation2 + $0x180] sm:$0xff] }
  0x3e   : > { %v596_v14 = vpack.c.bf16 %v244_v12, %v242_v11  ;;  %v243_v16 = vld [vmem:[#allocation2 + $0x190] sm:$0xff]  ;;  %v246_v17 = vld [vmem:[#allocation2 + $0x1a8] sm:$0xff]  ;;  %v248_v18 = vld [vmem:[#allocation2 + $0x1b8] sm:$0xff] }
  0x3f   : > { %v598_v19 = vpack.c.bf16 %v243_v16, %v241_v15  ;;  %v600_v20 = vpack.c.bf16 %v248_v18, %v246_v17  ;;  %v245_v21 = vld [vmem:[#allocation2 + $0x1a0] sm:$0xff]  ;;  %v247_v22 = vld [vmem:[#allocation2 + $0x1b0] sm:$0xff]  ;;  %v250_v23 = vld [vmem:[#allocation2 + $0x1c8] sm:$0xff] }
  0x40   : > { %567 = vmatpush1.bf16.msra.mxu0 %v566_v31  ;;  %631 = vmatpush1.bf16.msra.mxu1 %v566_v31  ;;  %v252_v24 = vld [vmem:[#allocation2 + $0x1d8] sm:$0xff]  ;;  %v602_v25 = vpack.c.bf16 %v247_v22, %v245_v21  ;;  %v249_v27 = vld [vmem:[#allocation2 + $0x1c0] sm:$0xff]  ;;  %v251_v28 = vld [vmem:[#allocation2 + $0x1d0] sm:$0xff] }
  0x41   : > { %569 = vmatprep.subr.bf16.mxu0 %v568_v32  ;;  %633 = vmatprep.subr.bf16.mxu1 %v568_v32  ;;  %v604_v26 = vpack.c.bf16 %v252_v24, %v250_v23  ;;  %v254_v29 = vld [vmem:[#allocation2 + $0x1e8] sm:$0xff]  ;;  %v256_v30 = vld [vmem:[#allocation2 + $0x1f8] sm:$0xff]  ;;  %v606_v31 = vpack.c.bf16 %v251_v28, %v249_v27  ;;  %v253_v33 = vld [vmem:[#allocation2 + $0x1e0] sm:$0xff] }
  0x42   : > { %v608_v32 = vpack.c.bf16 %v256_v30, %v254_v29  ;;  %v255_v34 = vld [vmem:[#allocation2 + $0x1f0] sm:$0xff] }
  0x43   : > { %v610_v35 = vpack.c.bf16 %v255_v34, %v253_v33 }
  0x44   : > { %571 = vmatpush1.bf16.msra.mxu0 %v570_v37  ;;  %635 = vmatpush1.bf16.msra.mxu1 %v570_v37 }
  0x45   : > { %573 = vmatprep.subr.bf16.mxu0 %v572_v38  ;;  %637 = vmatprep.subr.bf16.mxu1 %v572_v38 }
  0x48   : > { %575 = vmatpush1.bf16.msra.mxu0 %v574_v47  ;;  %639 = vmatpush1.bf16.msra.mxu1 %v574_v47 }
  0x49   : > { %577 = vmatprep.subr.bf16.mxu0 %v576_v48  ;;  %641 = vmatprep.subr.bf16.mxu1 %v576_v48 }
  0x4c   : > { %579 = vmatpush1.bf16.msra.mxu0 %v578_v53  ;;  %643 = vmatpush1.bf16.msra.mxu1 %v578_v53 }
  0x4d   : > { %581 = vmatprep.subr.bf16.mxu0 %v580_v54  ;;  %645 = vmatprep.subr.bf16.mxu1 %v580_v54 }
  0x50   : > { %583 = vmatpush1.bf16.msra.mxu0 %v582_v59  ;;  %647 = vmatpush1.bf16.msra.mxu1 %v582_v59 }
  0x51   : > { %585 = vmatprep.subr.bf16.mxu0 %v584_v60  ;;  %649 = vmatprep.subr.bf16.mxu1 %v584_v60 }
  0x54   : > { %587 = vmatpush1.bf16.msra.mxu0 %v586_v1  ;;  %651 = vmatpush1.bf16.msra.mxu1 %v586_v1 }
  0x55   : > { %589 = vmatprep.subr.bf16.mxu0 %v588_v2  ;;  %653 = vmatprep.subr.bf16.mxu1 %v588_v2 }
  0x58   : > { %591 = vmatpush1.bf16.msra.mxu0 %v590_v7  ;;  %655 = vmatpush1.bf16.msra.mxu1 %v590_v7 }
  0x59   : > { %593 = vmatprep.subr.bf16.mxu0 %v592_v8  ;;  %657 = vmatprep.subr.bf16.mxu1 %v592_v8 }
  0x5c   : > { %595 = vmatpush1.bf16.msra.mxu0 %v594_v13  ;;  %659 = vmatpush1.bf16.msra.mxu1 %v594_v13 }
  0x5d   : > { %597 = vmatprep.subr.bf16.mxu0 %v596_v14  ;;  %661 = vmatprep.subr.bf16.mxu1 %v596_v14 }
  0x60   : > { %599 = vmatpush1.bf16.msra.mxu0 %v598_v19  ;;  %663 = vmatpush1.bf16.msra.mxu1 %v598_v19 }
  0x61   : > { %601 = vmatprep.subr.bf16.mxu0 %v600_v20  ;;  %665 = vmatprep.subr.bf16.mxu1 %v600_v20 }
  0x64   : > { %603 = vmatpush1.bf16.msra.mxu0 %v602_v25  ;;  %667 = vmatpush1.bf16.msra.mxu1 %v602_v25 }
  0x65   : > { %605 = vmatprep.subr.bf16.mxu0 %v604_v26  ;;  %669 = vmatprep.subr.bf16.mxu1 %v604_v26 }
  0x68   : > { %607 = vmatpush1.bf16.msra.mxu0 %v606_v31  ;;  %671 = vmatpush1.bf16.msra.mxu1 %v606_v31 }
  0x69   : > { %609 = vmatprep.subr.bf16.mxu0 %v608_v32  ;;  %673 = vmatprep.subr.bf16.mxu1 %v608_v32 }
  0x6c   : > { %611 = vmatpush1.bf16.msra.mxu0 %v610_v35  ;;  %675 = vmatpush1.bf16.msra.mxu1 %v610_v35 }
  0x6f   : > { %336 = vmatmul.mubr.f32.vlgmr.msra.gmra.mrb[0].mxu0 %v854_v41  ;;  %418 = vmatmul.mubr.f32.vlgmr.msra.gmra.mrb[0].mxu1 %v858_v45 }
 0x142   : > { %v337_v36 = vpop.f32.mrb[0].mxu0  ;;  %v419_v37 = vpop.f32.mrb[0].mxu1 }
 0x143   : > { %v339_v38 = vpop.f32.mrb[1].mxu0  ;;  %v421_v39 = vpop.f32.mrb[1].mxu1 }
 0x144   : > { %v427_v40 = vadd.f32 %v419_v37, %v339_v38  ;;  %v424_v42 = vsub.f32 %v337_v36, %v421_v39 }
 0x146   : > { %543 = vst.msk [vmem:[%s192_s14 + $0x2] sm:$0x3] %vm425_vm0, %v427_v40  ;;  %426 = vst.msk [vmem:[%s192_s14] sm:$0x3] %vm425_vm0, %v424_v42 }
 0x147 PF: > { %s13_s11 = sadd.s32 1, %s767_s11   ;;  %s888_s9 = smov %s763_s10 }
 0x148   : > { %p10_p4 = scmp.ge.s32.totalorder %s13_s11, 4   ;;  %s889_s10 = smov %s891_s13 }
 0x14a   :  { %12 = sbr.rel (!%p10_p4) target bundleno = 2 (0x2), region = 65 }
 0x151   :  { %457 = vsyncpa [#allocation3], 1 }
 0x152   :  { %459 = vsyncpa [#allocation3 + $0x1], 1 }

</bundles_post_ra>
